<compile_context>
chip_gen: v6e
topology: v6e:2x2x1
jax: 0.10.0
libtpu: 0.0.40
codegen_flags: <defaults>
</compile_context>

<pallas_src>
import functools

import jax
import jax.numpy as jnp
from jax.experimental import pallas as pl
from jax.experimental.pallas import tpu as pltpu


def _round_up(x, m):
    return (x + m - 1) // m * m


def _round_down(x, m):
    return (x // m) * m


def _sublane(dtype):
    return {1: 32, 2: 16, 4: 8, 8: 8}.get(jnp.dtype(dtype).itemsize, 8)


def _vmem_capacity_bytes():
    # Physical VMEM per TensorCore; conservative (v7x) fallback if query fails.
    try:
        return int(pltpu.get_tpu_info().vmem_capacity_bytes)
    except Exception:
        return 64 * 1024 * 1024


def _make_kernel(inv_n, matmul_dtype):
    def kernel(emb_ref, w1t_ref, b1_ref, w2t_ref, b2_ref, out_ref,
               sum_acc, min_acc):
        n = pl.program_id(1)
        n_last = pl.num_programs(1) - 1

        emb = emb_ref[...]                                   # (TB, D), input dtype
        x = emb if matmul_dtype is None else emb.astype(matmul_dtype)

        # layer1 partial for this conjunct: relu(emb @ W1^T + b1), Dp lanes.
        h = jnp.dot(x, w1t_ref[...], preferred_element_type=jnp.float32)
        h = jnp.maximum(h + b1_ref[...], 0.0)                # (TB, Dp) f32

        @pl.when(n == 0)
        def _():
            sum_acc[...] = h
            min_acc[...] = emb

        @pl.when(n > 0)
        def _():
            sum_acc[...] = sum_acc[...] + h
            min_acc[...] = jnp.minimum(min_acc[...], emb)

        @pl.when(n == n_last)
        def _():
            h_mean = sum_acc[...] * inv_n                    # mean = sum*(1/N)
            g = jnp.dot(h_mean, w2t_ref[...],
                        preferred_element_type=jnp.float32)  # (TB, D)
            gate = jax.nn.sigmoid(g + b2_ref[...])           # EUP exp
            out_ref[...] = (min_acc[...].astype(jnp.float32) * gate
                            ).astype(out_ref.dtype)

    return kernel


@functools.partial(
    jax.jit,
    static_argnames=("max_block_b", "matmul_dtype", "single_buffer_weights"))
def _box_offset_intersection_impl(embeddings, w1, b1, w2, b2, *,
                                  max_block_b, matmul_dtype,
                                  single_buffer_weights):
    N, B, D = embeddings.shape
    esize = jnp.dtype(embeddings.dtype).itemsize
    sub = _sublane(embeddings.dtype)

    # --- batch: pad to the sublane multiple (no TB=B fallback) -------------
    Bp = _round_up(B, sub)
    if Bp != B:
        embeddings = jnp.pad(embeddings, ((0, 0), (0, Bp - B), (0, 0)))

    # --- features: emb stays un-padded in HBM; pad only the small weights so
    #     the hidden activation is lane-dense. ------------------------------
    Dp = _round_up(D, 128)
    w_dtype = embeddings.dtype if matmul_dtype is None else jnp.dtype(matmul_dtype)
    w1t = jnp.transpose(w1).astype(w_dtype)             # (D_in, D_out)
    w2t = jnp.transpose(w2).astype(jnp.float32)         # layer2 stays f32
    b1_2d = b1.reshape(1, D).astype(jnp.float32)
    b2_2d = b2.reshape(1, D).astype(jnp.float32)
    if Dp != D:
        pad = Dp - D
        w1t = jnp.pad(w1t, ((0, 0), (0, pad)))          # (D, Dp), zero cols
        w2t = jnp.pad(w2t, ((0, pad), (0, 0)))          # (Dp, D), zero rows
        b1_2d = jnp.pad(b1_2d, ((0, 0), (0, pad)))      # relu(0+0)=0 -> exact

    # --- VMEM budget from the physical capacity -----------------------------
    vmem_cap = _vmem_capacity_bytes()
    vmem_limit = int(vmem_cap * 0.90)                   # scoped-VMEM limit
    budget = int(vmem_cap * 0.70)                       # tiling budget

    wsize = jnp.dtype(w_dtype).itemsize
    weight_buf = 1 if single_buffer_weights else 2
    weight_bytes = weight_buf * (D * Dp * wsize          # w1t
                                 + Dp * D * 4            # w2t (f32)
                                 + Dp * 4 + D * 4)       # biases
    per_row = (D * esize * 2      # emb block, double-buffered
               + D * esize * 2    # out block, double-buffered
               + Dp * 4           # f32 running-sum scratch
               + D * esize)       # running-min scratch
    vmem_tb = max(sub, _round_down(max(budget - weight_bytes, 0) // per_row, sub))
    # TODO(synk): for very large D (Dp >~ 1024 on v7x's 64 MiB VMEM) tile the
    #             layer-1 weight along its output dim (extra grid axis or
    #             pltpu.emit_pipeline) instead of shrinking the batch tile.

    # Target >= ~2 MiB per emb DMA block (near HBM-roofline-saturating).
    if max_block_b is None:
        max_block_b = max(sub, _round_down((2 * 1024 * 1024) // (D * esize), sub))

    TB = min(Bp, max_block_b, vmem_tb)
    # Keep >= 2 batch blocks so the "parallel" axis shards over both v7x TCs.
    if Bp >= 2 * sub:
        TB = min(TB, _round_down(Bp // 2, sub))
    TB = max(sub, min(_round_down(TB, sub), Bp))

    grid = (pl.cdiv(Bp, TB), N)

    weight_mode = ({"pipeline_mode": pl.Buffered(1)}
                   if single_buffer_weights else {})
    in_specs = [
        # one conjunct (n) x one batch tile (i); N dim squeezed out.
        # NOTE: could sweep pipeline_mode=pl.Buffered(3) here if the per-step
        # DMA is still exposed in a trace.
        pl.BlockSpec((None, TB, D), lambda i, n: (n, i, 0)),
        # weights / biases: VMEM-resident across all grid steps.
        pl.BlockSpec((D, Dp), lambda i, n: (0, 0), **weight_mode),
        pl.BlockSpec((1, Dp), lambda i, n: (0, 0), **weight_mode),
        pl.BlockSpec((Dp, D), lambda i, n: (0, 0), **weight_mode),
        pl.BlockSpec((1, D), lambda i, n: (0, 0), **weight_mode),
    ]

    flops = 2 * N * Bp * D * Dp + 2 * Bp * Dp * D
    bytes_accessed = (embeddings.size * esize
                      + w1t.size * wsize + w2t.size * 4
                      + (b1_2d.size + b2_2d.size) * 4
                      + Bp * D * esize)
    cost = pl.CostEstimate(flops=flops, transcendentals=Bp * D,
                           bytes_accessed=bytes_accessed)

    out = pl.pallas_call(
        _make_kernel(1.0 / N, None if matmul_dtype is None else w_dtype),
        out_shape=jax.ShapeDtypeStruct((Bp, D), embeddings.dtype),
        grid_spec=pltpu.PrefetchScalarGridSpec(
            num_scalar_prefetch=0,
            grid=grid,
            in_specs=in_specs,
            out_specs=pl.BlockSpec((TB, D), lambda i, n: (i, 0)),
            scratch_shapes=[
                pltpu.VMEM((TB, Dp), jnp.float32),        # running sum of relu
                pltpu.VMEM((TB, D), embeddings.dtype),    # running min
            ],
        ),
        compiler_params=pltpu.CompilerParams(
            dimension_semantics=("parallel", "arbitrary"),
            vmem_limit_bytes=vmem_limit),
        cost_estimate=cost,
    )(embeddings, w1t, b1_2d, w2t, b2_2d)

    return out[:B] if Bp != B else out


def box_offset_intersection(embeddings, w1, b1, w2, b2, *,
                            max_block_b=None, matmul_dtype=jnp.bfloat16):
    """embeddings: (N, B, D); w*: (D, D) (PyTorch [out, in]); b*: (D,) -> (B, D).

    matmul_dtype: dtype of the dominant layer-1 matmul (default bf16 for
    native-rate MXU; min()/output/HBM stream stay in the input dtype, only the
    gate is perturbed -> loosen tolerances). Pass None for a bit-exact f32 path.
    """
    kwargs = dict(max_block_b=max_block_b, matmul_dtype=matmul_dtype)
    try:
        return _box_offset_intersection_impl(
            embeddings, w1, b1, w2, b2, single_buffer_weights=True, **kwargs)
    except Exception:
        # pl.Buffered(1) (single-buffered resident weights) not supported by the
        # installed jax -> fall back to default double buffering of weights.
        return _box_offset_intersection_impl(
            embeddings, w1, b1, w2, b2, single_buffer_weights=False, **kwargs)


def _reference(embeddings, w1, b1, w2, b2):
    h = jax.nn.relu(jnp.einsum("nbd,ed->nbe", embeddings, w1) + b1)
    h_mean = jnp.mean(h, axis=0)
    gate = jax.nn.sigmoid(h_mean @ w2.T + b2)
    offset = jnp.min(embeddings, axis=0)
    return offset * gate


if __name__ == "__main__":
    N, B, D = 8, 4, 32  # N conjuncts, batch, embedding dim

    key = jax.random.PRNGKey(0)
    k_emb, k_w1, k_b1, k_w2, k_b2 = jax.random.split(key, 5)

    embeddings = jax.random.normal(k_emb, (N, B, D), dtype=jnp.float32)

    # nn.init.xavier_uniform_: U(-a, a), a = sqrt(6 / (fan_in + fan_out))
    xav = (6.0 / (D + D)) ** 0.5
    w1 = jax.random.uniform(k_w1, (D, D), jnp.float32, -xav, xav)
    w2 = jax.random.uniform(k_w2, (D, D), jnp.float32, -xav, xav)
    # nn.Linear default bias init: U(-1/sqrt(fan_in), 1/sqrt(fan_in))
    bb = 1.0 / (D ** 0.5)
    b1 = jax.random.uniform(k_b1, (D,), jnp.float32, -bb, bb)
    b2 = jax.random.uniform(k_b2, (D,), jnp.float32, -bb, bb)

    ref = _reference(embeddings, w1, b1, w2, b2)

    # Default path: bf16 layer-1 matmul (gate slightly perturbed).
    out = jax.block_until_ready(
        box_offset_intersection(embeddings, w1, b1, w2, b2))
    assert out.shape == (B, D)
    assert jnp.allclose(out, ref, atol=5e-2, rtol=5e-2)

    # Bit-exact f32 matmul path.
    out_f32 = jax.block_until_ready(
        box_offset_intersection(embeddings, w1, b1, w2, b2, matmul_dtype=None))
    assert out_f32.shape == (B, D)
    assert jnp.allclose(out_f32, ref, atol=1e-5, rtol=1e-5)

    print("KERNEL_OK")
</pallas_src>

<mosaic_0001>
module attributes {stable_mosaic.version = 11 : i64} {
  func.func @kernel(%arg0: i32, %arg1: i32, %arg2: memref<1x8x32xf32, #tpu.memory_space<vmem>>, %arg3: memref<32x128xbf16, #tpu.memory_space<vmem>>, %arg4: memref<1x128xf32, #tpu.memory_space<vmem>>, %arg5: memref<128x32xf32, #tpu.memory_space<vmem>>, %arg6: memref<1x32xf32, #tpu.memory_space<vmem>>, %arg7: memref<8x32xf32, #tpu.memory_space<vmem>>, %arg8: memref<8x128xf32, #tpu.memory_space<vmem>>, %arg9: memref<8x32xf32, #tpu.memory_space<vmem>>) attributes {dimension_semantics = [#tpu.dimension_semantics<parallel>, #tpu.dimension_semantics<arbitrary>], iteration_bounds = array<i64: 1, 8>, scalar_prefetch = 0 : i64, scratch_operands = 2 : i64, tpu.core_type = #tpu.core_type<tc>, window_params = [{transform_indices = @transform_0, window_bounds = array<i64: 1, 8, 32>}, {pipeline_mode = #tpu.pipeline_mode<synchronous>, transform_indices = @transform_1, window_bounds = array<i64: 32, 128>}, {pipeline_mode = #tpu.pipeline_mode<synchronous>, transform_indices = @transform_2, window_bounds = array<i64: 1, 128>}, {pipeline_mode = #tpu.pipeline_mode<synchronous>, transform_indices = @transform_3, window_bounds = array<i64: 128, 32>}, {pipeline_mode = #tpu.pipeline_mode<synchronous>, transform_indices = @transform_4, window_bounds = array<i64: 1, 32>}, {transform_indices = @transform_5, window_bounds = array<i64: 8, 32>}]} {
    %c0 = arith.constant 0 : index
    %c0_0 = arith.constant 0 : index
    %c0_1 = arith.constant 0 : index
    %0 = vector.load %arg2[%c0, %c0_0, %c0_1] : memref<1x8x32xf32, #tpu.memory_space<vmem>>, vector<1x8x32xf32>
    %1 = vector.shape_cast %0 : vector<1x8x32xf32> to vector<8x32xf32>
    %2 = arith.truncf %1 : vector<8x32xf32> to vector<8x32xbf16>
    %c0_2 = arith.constant 0 : index
    %c0_3 = arith.constant 0 : index
    %3 = vector.load %arg3[%c0_2, %c0_3] : memref<32x128xbf16, #tpu.memory_space<vmem>>, vector<32x128xbf16>
    %cst = arith.constant dense<0.000000e+00> : vector<8x128xf32>
    %4 = tpu.matmul %2, %3, %cst {dimension_numbers = #tpu.dot_dimension_numbers<[1], [0], [0], [1], [0, 0, 1, 1], [], []>} : vector<8x32xbf16>, vector<32x128xbf16>, vector<8x128xf32> -> vector<8x128xf32>
    %c0_4 = arith.constant 0 : index
    %c0_5 = arith.constant 0 : index
    %5 = vector.load %arg4[%c0_4, %c0_5] : memref<1x128xf32, #tpu.memory_space<vmem>>, vector<1x128xf32>
    %6 = vector.broadcast %5 : vector<1x128xf32> to vector<8x128xf32>
    %7 = arith.addf %4, %6 : vector<8x128xf32>
    %cst_6 = arith.constant 0.000000e+00 : f32
    %8 = vector.broadcast %cst_6 : f32 to vector<8x128xf32>
    %9 = arith.maximumf %7, %8 : vector<8x128xf32>
    %c0_i32 = arith.constant 0 : i32
    %10 = arith.cmpi eq, %arg1, %c0_i32 : i32
    %11 = arith.extui %10 : i1 to i32
    %c0_i32_7 = arith.constant 0 : i32
    %12 = arith.cmpi ne, %11, %c0_i32_7 : i32
    scf.if %12 {
      %c0_11 = arith.constant 0 : index
      %c0_12 = arith.constant 0 : index
      %19 = vector.load %arg8[%c0_11, %c0_12] : memref<8x128xf32, #tpu.memory_space<vmem>>, vector<8x128xf32>
      tpu.vector_store %arg8[%c0_11, %c0_12], %9 {strides = array<i32>} : memref<8x128xf32, #tpu.memory_space<vmem>>, vector<8x128xf32>,
      %c0_13 = arith.constant 0 : index
      %c0_14 = arith.constant 0 : index
      %20 = vector.load %arg9[%c0_13, %c0_14] : memref<8x32xf32, #tpu.memory_space<vmem>>, vector<8x32xf32>
      tpu.vector_store %arg9[%c0_13, %c0_14], %1 {strides = array<i32>} : memref<8x32xf32, #tpu.memory_space<vmem>>, vector<8x32xf32>,
    } else {
    }
    %c0_i32_8 = arith.constant 0 : i32
    %13 = arith.cmpi sgt, %arg1, %c0_i32_8 : i32
    %14 = arith.extui %13 : i1 to i32
    %c0_i32_9 = arith.constant 0 : i32
    %15 = arith.cmpi ne, %14, %c0_i32_9 : i32
    scf.if %15 {
      %c0_11 = arith.constant 0 : index
      %c0_12 = arith.constant 0 : index
      %19 = vector.load %arg8[%c0_11, %c0_12] : memref<8x128xf32, #tpu.memory_space<vmem>>, vector<8x128xf32>
      %20 = arith.addf %19, %9 : vector<8x128xf32>
      %c0_13 = arith.constant 0 : index
      %c0_14 = arith.constant 0 : index
      %21 = vector.load %arg8[%c0_13, %c0_14] : memref<8x128xf32, #tpu.memory_space<vmem>>, vector<8x128xf32>
      tpu.vector_store %arg8[%c0_13, %c0_14], %20 {strides = array<i32>} : memref<8x128xf32, #tpu.memory_space<vmem>>, vector<8x128xf32>,
      %c0_15 = arith.constant 0 : index
      %c0_16 = arith.constant 0 : index
      %22 = vector.load %arg9[%c0_15, %c0_16] : memref<8x32xf32, #tpu.memory_space<vmem>>, vector<8x32xf32>
      %23 = arith.minimumf %22, %1 : vector<8x32xf32>
      %c0_17 = arith.constant 0 : index
      %c0_18 = arith.constant 0 : index
      %24 = vector.load %arg9[%c0_17, %c0_18] : memref<8x32xf32, #tpu.memory_space<vmem>>, vector<8x32xf32>
      tpu.vector_store %arg9[%c0_17, %c0_18], %23 {strides = array<i32>} : memref<8x32xf32, #tpu.memory_space<vmem>>, vector<8x32xf32>,
    } else {
    }
    %c7_i32 = arith.constant 7 : i32
    %16 = arith.cmpi eq, %arg1, %c7_i32 : i32
    %17 = arith.extui %16 : i1 to i32
    %c0_i32_10 = arith.constant 0 : i32
    %18 = arith.cmpi ne, %17, %c0_i32_10 : i32
    scf.if %18 {
      %c0_11 = arith.constant 0 : index
      %c0_12 = arith.constant 0 : index
      %19 = vector.load %arg8[%c0_11, %c0_12] : memref<8x128xf32, #tpu.memory_space<vmem>>, vector<8x128xf32>
      %cst_13 = arith.constant 1.250000e-01 : f32
      %20 = vector.broadcast %cst_13 : f32 to vector<8x128xf32>
      %21 = arith.mulf %19, %20 : vector<8x128xf32>
      %c0_14 = arith.constant 0 : index
      %c0_15 = arith.constant 0 : index
      %22 = vector.load %arg5[%c0_14, %c0_15] : memref<128x32xf32, #tpu.memory_space<vmem>>, vector<128x32xf32>
      %cst_16 = arith.constant dense<0.000000e+00> : vector<8x32xf32>
      %23 = tpu.matmul %21, %22, %cst_16 {dimension_numbers = #tpu.dot_dimension_numbers<[1], [0], [0], [1], [0, 0, 1, 1], [], []>} : vector<8x128xf32>, vector<128x32xf32>, vector<8x32xf32> -> vector<8x32xf32>
      %c0_17 = arith.constant 0 : index
      %c0_18 = arith.constant 0 : index
      %24 = vector.load %arg6[%c0_17, %c0_18] : memref<1x32xf32, #tpu.memory_space<vmem>>, vector<1x32xf32>
      %25 = vector.broadcast %24 : vector<1x32xf32> to vector<8x32xf32>
      %26 = arith.addf %23, %25 : vector<8x32xf32>
      %27 = arith.negf %26 : vector<8x32xf32>
      %28 = math.exp %27 : vector<8x32xf32>
      %cst_19 = arith.constant 1.000000e+00 : f32
      %29 = vector.broadcast %cst_19 : f32 to vector<8x32xf32>
      %30 = arith.addf %29, %28 : vector<8x32xf32>
      %31 = arith.divf %29, %30 : vector<8x32xf32>
      %c0_20 = arith.constant 0 : index
      %c0_21 = arith.constant 0 : index
      %32 = vector.load %arg9[%c0_20, %c0_21] : memref<8x32xf32, #tpu.memory_space<vmem>>, vector<8x32xf32>
      %33 = arith.mulf %32, %31 : vector<8x32xf32>
      %c0_22 = arith.constant 0 : index
      %c0_23 = arith.constant 0 : index
      %34 = vector.load %arg7[%c0_22, %c0_23] : memref<8x32xf32, #tpu.memory_space<vmem>>, vector<8x32xf32>
      tpu.vector_store %arg7[%c0_22, %c0_23], %33 {strides = array<i32>} : memref<8x32xf32, #tpu.memory_space<vmem>>, vector<8x32xf32>,
    } else {
    }
    return
  }
  func.func @transform_0(%arg0: i32, %arg1: i32) -> (i32, i32, i32) {
    %c0_i32 = arith.constant 0 : i32
    %c0_i32_0 = arith.constant 0 : i32
    return %arg1, %arg0, %c0_i32 : i32, i32, i32
  }
  func.func @transform_1(%arg0: i32, %arg1: i32) -> (i32, i32) {
    %c0_i32 = arith.constant 0 : i32
    %c0_i32_0 = arith.constant 0 : i32
    %c0_i32_1 = arith.constant 0 : i32
    return %c0_i32, %c0_i32_0 : i32, i32
  }
  func.func @transform_2(%arg0: i32, %arg1: i32) -> (i32, i32) {
    %c0_i32 = arith.constant 0 : i32
    %c0_i32_0 = arith.constant 0 : i32
    %c0_i32_1 = arith.constant 0 : i32
    return %c0_i32, %c0_i32_0 : i32, i32
  }
  func.func @transform_3(%arg0: i32, %arg1: i32) -> (i32, i32) {
    %c0_i32 = arith.constant 0 : i32
    %c0_i32_0 = arith.constant 0 : i32
    %c0_i32_1 = arith.constant 0 : i32
    return %c0_i32, %c0_i32_0 : i32, i32
  }
  func.func @transform_4(%arg0: i32, %arg1: i32) -> (i32, i32) {
    %c0_i32 = arith.constant 0 : i32
    %c0_i32_0 = arith.constant 0 : i32
    %c0_i32_1 = arith.constant 0 : i32
    return %c0_i32, %c0_i32_0 : i32, i32
  }
  func.func @transform_5(%arg0: i32, %arg1: i32) -> (i32, i32) {
    %c0_i32 = arith.constant 0 : i32
    %c0_i32_0 = arith.constant 0 : i32
    return %arg0, %c0_i32 : i32, i32
  }
}

module attributes {stable_mosaic.version = 11 : i64} {
  func.func @kernel(%arg0: i32, %arg1: i32, %arg2: memref<1x8x32xf32, #tpu.memory_space<vmem>>, %arg3: memref<32x128xbf16, #tpu.memory_space<vmem>>, %arg4: memref<1x128xf32, #tpu.memory_space<vmem>>, %arg5: memref<128x32xf32, #tpu.memory_space<vmem>>, %arg6: memref<1x32xf32, #tpu.memory_space<vmem>>, %arg7: memref<8x32xf32, #tpu.memory_space<vmem>>, %arg8: memref<8x128xf32, #tpu.memory_space<vmem>>, %arg9: memref<8x32xf32, #tpu.memory_space<vmem>>) attributes {dimension_semantics = [#tpu.dimension_semantics<parallel>, #tpu.dimension_semantics<arbitrary>], iteration_bounds = array<i64: 1, 8>, scalar_prefetch = 0 : i64, scratch_operands = 2 : i64, tpu.core_type = #tpu.core_type<tc>, window_params = [{transform_indices = @transform_0, window_bounds = array<i64: 1, 8, 32>}, {pipeline_mode = #tpu.pipeline_mode<synchronous>, transform_indices = @transform_1, window_bounds = array<i64: 32, 128>}, {pipeline_mode = #tpu.pipeline_mode<synchronous>, transform_indices = @transform_2, window_bounds = array<i64: 1, 128>}, {pipeline_mode = #tpu.pipeline_mode<synchronous>, transform_indices = @transform_3, window_bounds = array<i64: 128, 32>}, {pipeline_mode = #tpu.pipeline_mode<synchronous>, transform_indices = @transform_4, window_bounds = array<i64: 1, 32>}, {transform_indices = @transform_5, window_bounds = array<i64: 8, 32>}]} {
    %c0 = arith.constant 0 : index
    %c0_0 = arith.constant 0 : index
    %c0_1 = arith.constant 0 : index
    %0 = vector.load %arg2[%c0, %c0_0, %c0_1] : memref<1x8x32xf32, #tpu.memory_space<vmem>>, vector<1x8x32xf32>
    %1 = vector.shape_cast %0 : vector<1x8x32xf32> to vector<8x32xf32>
    %2 = arith.truncf %1 : vector<8x32xf32> to vector<8x32xbf16>
    %c0_2 = arith.constant 0 : index
    %c0_3 = arith.constant 0 : index
    %3 = vector.load %arg3[%c0_2, %c0_3] : memref<32x128xbf16, #tpu.memory_space<vmem>>, vector<32x128xbf16>
    %cst = arith.constant dense<0.000000e+00> : vector<8x128xf32>
    %4 = tpu.matmul %2, %3, %cst {dimension_numbers = #tpu.dot_dimension_numbers<[1], [0], [0], [1], [0, 0, 1, 1], [], []>} : vector<8x32xbf16>, vector<32x128xbf16>, vector<8x128xf32> -> vector<8x128xf32>
    %c0_4 = arith.constant 0 : index
    %c0_5 = arith.constant 0 : index
    %5 = vector.load %arg4[%c0_4, %c0_5] : memref<1x128xf32, #tpu.memory_space<vmem>>, vector<1x128xf32>
    %6 = vector.broadcast %5 : vector<1x128xf32> to vector<8x128xf32>
    %7 = arith.addf %4, %6 : vector<8x128xf32>
    %cst_6 = arith.constant 0.000000e+00 : f32
    %8 = vector.broadcast %cst_6 : f32 to vector<8x128xf32>
    %9 = arith.maximumf %7, %8 : vector<8x128xf32>
    %c0_i32 = arith.constant 0 : i32
    %10 = arith.cmpi eq, %arg1, %c0_i32 : i32
    %11 = arith.extui %10 : i1 to i32
    %c0_i32_7 = arith.constant 0 : i32
    %12 = arith.cmpi ne, %11, %c0_i32_7 : i32
    scf.if %12 {
      %c0_11 = arith.constant 0 : index
      %c0_12 = arith.constant 0 : index
      %19 = vector.load %arg8[%c0_11, %c0_12] : memref<8x128xf32, #tpu.memory_space<vmem>>, vector<8x128xf32>
      tpu.vector_store %arg8[%c0_11, %c0_12], %9 {strides = array<i32>} : memref<8x128xf32, #tpu.memory_space<vmem>>, vector<8x128xf32>,
      %c0_13 = arith.constant 0 : index
      %c0_14 = arith.constant 0 : index
      %20 = vector.load %arg9[%c0_13, %c0_14] : memref<8x32xf32, #tpu.memory_space<vmem>>, vector<8x32xf32>
      tpu.vector_store %arg9[%c0_13, %c0_14], %1 {strides = array<i32>} : memref<8x32xf32, #tpu.memory_space<vmem>>, vector<8x32xf32>,
    } else {
    }
    %c0_i32_8 = arith.constant 0 : i32
    %13 = arith.cmpi sgt, %arg1, %c0_i32_8 : i32
    %14 = arith.extui %13 : i1 to i32
    %c0_i32_9 = arith.constant 0 : i32
    %15 = arith.cmpi ne, %14, %c0_i32_9 : i32
    scf.if %15 {
      %c0_11 = arith.constant 0 : index
      %c0_12 = arith.constant 0 : index
      %19 = vector.load %arg8[%c0_11, %c0_12] : memref<8x128xf32, #tpu.memory_space<vmem>>, vector<8x128xf32>
      %20 = arith.addf %19, %9 : vector<8x128xf32>
      %c0_13 = arith.constant 0 : index
      %c0_14 = arith.constant 0 : index
      %21 = vector.load %arg8[%c0_13, %c0_14] : memref<8x128xf32, #tpu.memory_space<vmem>>, vector<8x128xf32>
      tpu.vector_store %arg8[%c0_13, %c0_14], %20 {strides = array<i32>} : memref<8x128xf32, #tpu.memory_space<vmem>>, vector<8x128xf32>,
      %c0_15 = arith.constant 0 : index
      %c0_16 = arith.constant 0 : index
      %22 = vector.load %arg9[%c0_15, %c0_16] : memref<8x32xf32, #tpu.memory_space<vmem>>, vector<8x32xf32>
      %23 = arith.minimumf %22, %1 : vector<8x32xf32>
      %c0_17 = arith.constant 0 : index
      %c0_18 = arith.constant 0 : index
      %24 = vector.load %arg9[%c0_17, %c0_18] : memref<8x32xf32, #tpu.memory_space<vmem>>, vector<8x32xf32>
      tpu.vector_store %arg9[%c0_17, %c0_18], %23 {strides = array<i32>} : memref<8x32xf32, #tpu.memory_space<vmem>>, vector<8x32xf32>,
    } else {
    }
    %c7_i32 = arith.constant 7 : i32
    %16 = arith.cmpi eq, %arg1, %c7_i32 : i32
    %17 = arith.extui %16 : i1 to i32
    %c0_i32_10 = arith.constant 0 : i32
    %18 = arith.cmpi ne, %17, %c0_i32_10 : i32
    scf.if %18 {
      %c0_11 = arith.constant 0 : index
      %c0_12 = arith.constant 0 : index
      %19 = vector.load %arg8[%c0_11, %c0_12] : memref<8x128xf32, #tpu.memory_space<vmem>>, vector<8x128xf32>
      %cst_13 = arith.constant 1.250000e-01 : f32
      %20 = vector.broadcast %cst_13 : f32 to vector<8x128xf32>
      %21 = arith.mulf %19, %20 : vector<8x128xf32>
      %c0_14 = arith.constant 0 : index
      %c0_15 = arith.constant 0 : index
      %22 = vector.load %arg5[%c0_14, %c0_15] : memref<128x32xf32, #tpu.memory_space<vmem>>, vector<128x32xf32>
      %cst_16 = arith.constant dense<0.000000e+00> : vector<8x32xf32>
      %23 = tpu.matmul %21, %22, %cst_16 {dimension_numbers = #tpu.dot_dimension_numbers<[1], [0], [0], [1], [0, 0, 1, 1], [], []>} : vector<8x128xf32>, vector<128x32xf32>, vector<8x32xf32> -> vector<8x32xf32>
      %c0_17 = arith.constant 0 : index
      %c0_18 = arith.constant 0 : index
      %24 = vector.load %arg6[%c0_17, %c0_18] : memref<1x32xf32, #tpu.memory_space<vmem>>, vector<1x32xf32>
      %25 = vector.broadcast %24 : vector<1x32xf32> to vector<8x32xf32>
      %26 = arith.addf %23, %25 : vector<8x32xf32>
      %27 = arith.negf %26 : vector<8x32xf32>
      %28 = math.exp %27 : vector<8x32xf32>
      %cst_19 = arith.constant 1.000000e+00 : f32
      %29 = vector.broadcast %cst_19 : f32 to vector<8x32xf32>
      %30 = arith.addf %29, %28 : vector<8x32xf32>
      %31 = arith.divf %29, %30 : vector<8x32xf32>
      %c0_20 = arith.constant 0 : index
      %c0_21 = arith.constant 0 : index
      %32 = vector.load %arg9[%c0_20, %c0_21] : memref<8x32xf32, #tpu.memory_space<vmem>>, vector<8x32xf32>
      %33 = arith.mulf %32, %31 : vector<8x32xf32>
      %c0_22 = arith.constant 0 : index
      %c0_23 = arith.constant 0 : index
      %34 = vector.load %arg7[%c0_22, %c0_23] : memref<8x32xf32, #tpu.memory_space<vmem>>, vector<8x32xf32>
      tpu.vector_store %arg7[%c0_22, %c0_23], %33 {strides = array<i32>} : memref<8x32xf32, #tpu.memory_space<vmem>>, vector<8x32xf32>,
    } else {
    }
    return
  }
  func.func @transform_0(%arg0: i32, %arg1: i32) -> (i32, i32, i32) {
    %c0_i32 = arith.constant 0 : i32
    %c0_i32_0 = arith.constant 0 : i32
    return %arg1, %arg0, %c0_i32 : i32, i32, i32
  }
  func.func @transform_1(%arg0: i32, %arg1: i32) -> (i32, i32) {
    %c0_i32 = arith.constant 0 : i32
    %c0_i32_0 = arith.constant 0 : i32
    %c0_i32_1 = arith.constant 0 : i32
    return %c0_i32, %c0_i32_0 : i32, i32
  }
  func.func @transform_2(%arg0: i32, %arg1: i32) -> (i32, i32) {
    %c0_i32 = arith.constant 0 : i32
    %c0_i32_0 = arith.constant 0 : i32
    %c0_i32_1 = arith.constant 0 : i32
    return %c0_i32, %c0_i32_0 : i32, i32
  }
  func.func @transform_3(%arg0: i32, %arg1: i32) -> (i32, i32) {
    %c0_i32 = arith.constant 0 : i32
    %c0_i32_0 = arith.constant 0 : i32
    %c0_i32_1 = arith.constant 0 : i32
    return %c0_i32, %c0_i32_0 : i32, i32
  }
  func.func @transform_4(%arg0: i32, %arg1: i32) -> (i32, i32) {
    %c0_i32 = arith.constant 0 : i32
    %c0_i32_0 = arith.constant 0 : i32
    %c0_i32_1 = arith.constant 0 : i32
    return %c0_i32, %c0_i32_0 : i32, i32
  }
  func.func @transform_5(%arg0: i32, %arg1: i32) -> (i32, i32) {
    %c0_i32 = arith.constant 0 : i32
    %c0_i32_0 = arith.constant 0 : i32
    return %arg0, %c0_i32 : i32, i32
  }
}

</mosaic_0001>

<bundles_post_ra>
// kernel: _box_offset_intersection_impl.1
= control target key start
LH: loop header
LB: loop body
LE: loop exit
PB: predicated region body
PF: predicated region fallthrough
CT: control target
= control target key end

     0   :  { %s672_s18 = smov 0   ;;  %s674_s19 = smov 0   ;;  %s776_s0 = inlined_call_operand.vmem [shape: f32[8,8,32], index: 0, kind: input, shape index: {}]   ;;  %s777_s1 = inlined_call_operand.vmem [shape: bf16[32,128], index: 1, kind: input, shape index: {}]   ;;  %s778_s2 = inlined_call_operand.vmem [shape: f32[1,128], index: 2, kind: input, shape index: {}]   ;;  %s779_s3 = inlined_call_operand.vmem [shape: f32[128,32], index: 3, kind: input, shape index: {}]   ;;  %s780_s4 = inlined_call_operand.vmem [shape: f32[1,32], index: 4, kind: input, shape index: {}]   ;;  %s781_s5 = inlined_call_operand.vmem [shape: f32[8,32], index: 5, kind: output, shape index: {}]  }
   0x1   :  { %s676_s20 = smov 0  }
   0x2 LB: > { %s24_s21 = sadd.s32 1, %s632_s19  ;;  %p503_p0 = scmp.ge.s32.totalorder %s636_s20, 1  ;;  %s636_s20 = sphi %s676_s20, %s15_s20   ;;  %s632_s19 = sphi %s674_s19, %s783_s19   ;;  %s628_s18 = sphi %s672_s18, %s782_s18  }
   0x3   : > { %p25_p1 = scmp.ge.s32.totalorder %s24_s21, 8  ;;  %p203_p2 = scmp.lt.s32.totalorder %s636_s20, 9 }
   0x5   : > { %s785_s21 = smov (%p25_p1, %s24_s21), 0  ;;  %p204_p3 = pnand %p503_p0, %p203_p2 }
   0x6   : > { %p232_p4 = scmp.lt.s32.totalorder (!%p204_p3), %s628_s18, 7  ;;  %p509_p5 = scmp.ne.s32.totalorder (!%p204_p3), %s628_s18, 0 }
   0x7   : > { %207 = sbr.rel (%p204_p3) target bundleno = 502 (0x1f6), region = 40 }
   0xc   : > { %v608_v0 = vld [vmem:[%s777_s1 + $0x8] sm:$0xff]   ;;  %v638_v1 = vmov 0.0   ;;  %v609_v2 = vld [vmem:[%s777_s1] sm:$0xff]   ;;  %vm639_vm0 = vmmov 0   ;;  %s233_s26 = scalar_select %p232_p4, %s628_s18, 7  ;;  %vm269_vm1 = vcmask 261120  }
   0xd   : > { %537 = vmatprep.subr.bf16.mxu0 %v638_v1  ;;  %541 = vmatprep.mubr.msk.bf16.mxu0 %vm639_vm0, %v638_v1  ;;  %v505_v5 = vld [vmem:[%s778_s2] ss:$0 sm:$0xff] }
   0xe   : > { %538 = vmatpush3.bf16.msra.mxu0 %v608_v0  ;;  %s504_s27 = sshll.u32 %s233_s26, 3 }
   0xf   : > { %539 = vmatprep.subr.bf16.mxu0 %v638_v1  ;;  %s238_s30 = scalar_lea.vmem %s776_s0, %s504_s27 }
  0x10   : > { %v244_v3 = vld [vmem:[%s238_s30] sm:$0xff] }
  0x11   : > { %v245_v4 = vpack.c.bf16 %v244_v3, %v244_v3 }
  0x12   : > { %540 = vmatpush3.bf16.msra.mxu0 %v609_v2 }
  0x15   : > { %542 = vmatmul.mubr.msk.bf16.vlgmr.msra.gmra.mxu0 %vm269_vm1, %v245_v4 }
  0xd5   : > { %v307_v6 = vpop.f32.mrf.mxu0 }
  0xd6   : > { %v308_v7 = vadd.f32 %v505_v5, %v307_v6 }
  0xd7   : > { %v543_v8 = vpop.f32.mrf.mxu0  ;;  %317 = sbr.rel (%p509_p5) target bundleno = 221 (0xdd), region = 44 }
  0xd8   : > { %v313_v9 = vmax.f32 %v308_v7, 0.0 }
  0xd9   : > { %v310_v10 = vpop.f32.mrf.mxu0 }
  0xdb   : > { %v544_v11 = vpop.f32.mrf.mxu0 }
  0xdc   : > { %318 = vst [vmem:[#allocation2] sm:$0xff] %v313_v9  ;;  %319 = vst.msk [vmem:[#allocation3] sm:$0xff] %vm269_vm1, %v244_v3 }
  0xdd PF: > { %p510_p6 = scmp.le.s32.totalorder %s628_s18, 0 }
  0xdf   : > { %323 = sbr.rel (%p510_p6) target bundleno = 232 (0xe8), region = 48 }
  0xe4   : > { %v324_v12 = vld [vmem:[#allocation2] sm:$0xff]  ;;  %v327_v13 = vld [vmem:[#allocation3] sm:$0xff] }
  0xe5   : > { %v325_v14 = vadd.f32 %v324_v12, %v313_v9  ;;  %v328_v15 = vmin.f32 %v327_v13, %v244_v3 }
  0xe7   : > { %326 = vst [vmem:[#allocation2] sm:$0xff] %v325_v14  ;;  %329 = vst.msk [vmem:[#allocation3] sm:$0xff] %vm269_vm1, %v328_v15 }
  0xe8 PF: > { %p511_p7 = scmp.ne.s32.totalorder %s628_s18, 7 }
  0xea   : > { %333 = sbr.rel (%p511_p7) target bundleno = 502 (0x1f6), region = 52 }
  0xef   : > { %v351_v16 = vld [vmem:[%s779_s3 + $0x78] sm:$0xff]  ;;  %v640_v17 = vmov 0.0   ;;  %v350_v18 = vld [vmem:[%s779_s3 + $0x70] sm:$0xff]  ;;  %vm641_vm2 = vmmov 0   ;;  %v349_v19 = vld [vmem:[%s779_s3 + $0x68] sm:$0xff] }
  0xf0   : > { %545 = vmatprep.subr.mxu0 %v640_v17  ;;  %577 = vmatprep.mubr.msk.f32.mxu0 %vm641_vm2, %v640_v17  ;;  %v348_v20 = vld [vmem:[%s779_s3 + $0x60] sm:$0xff]  ;;  %v347_v21 = vld [vmem:[%s779_s3 + $0x58] sm:$0xff]  ;;  %v346_v22 = vld [vmem:[%s779_s3 + $0x50] sm:$0xff] }
  0xf1   : > { %546 = vmatpush3.msra.mxu0 %v351_v16  ;;  %v345_v23 = vld [vmem:[%s779_s3 + $0x48] sm:$0xff]  ;;  %v344_v24 = vld [vmem:[%s779_s3 + $0x40] sm:$0xff]  ;;  %v343_v25 = vld [vmem:[%s779_s3 + $0x38] sm:$0xff] }
  0xf2   : > { %547 = vmatprep.subr.mxu0 %v640_v17  ;;  %v342_v26 = vld [vmem:[%s779_s3 + $0x30] sm:$0xff]  ;;  %v341_v27 = vld [vmem:[%s779_s3 + $0x28] sm:$0xff]  ;;  %v340_v28 = vld [vmem:[%s779_s3 + $0x20] sm:$0xff] }
  0xf3   : > { %548 = vmatpush3.msra.mxu0 %v350_v18  ;;  %v339_v29 = vld [vmem:[%s779_s3 + $0x18] sm:$0xff]  ;;  %v338_v30 = vld [vmem:[%s779_s3 + $0x10] sm:$0xff]  ;;  %v334_v31 = vld [vmem:[#allocation2] sm:$0xff] }
  0xf4   : > { %549 = vmatprep.subr.mxu0 %v640_v17  ;;  %v337_v32 = vld [vmem:[%s779_s3 + $0x8] sm:$0xff]  ;;  %v336_v33 = vld [vmem:[%s779_s3] sm:$0xff]  ;;  %v335_v34 = vmul.f32 0.125, %v334_v31 }
  0xf5   : > { %550 = vmatpush3.msra.mxu0 %v349_v19  ;;  %v512_v35 = vld [vmem:[%s780_s4] ss:$0 sm:$0xff]  ;;  %v435_v42 = vld [vmem:[#allocation3] sm:$0xff] }
  0xf6   : > { %551 = vmatprep.subr.mxu0 %v640_v17 }
  0xf7   : > { %552 = vmatpush3.msra.mxu0 %v348_v20 }
  0xf8   : > { %553 = vmatprep.subr.mxu0 %v640_v17 }
  0xf9   : > { %554 = vmatpush3.msra.mxu0 %v347_v21 }
  0xfa   : > { %555 = vmatprep.subr.mxu0 %v640_v17 }
  0xfb   : > { %556 = vmatpush3.msra.mxu0 %v346_v22 }
  0xfc   : > { %557 = vmatprep.subr.mxu0 %v640_v17 }
  0xfd   : > { %558 = vmatpush3.msra.mxu0 %v345_v23 }
  0xfe   : > { %559 = vmatprep.subr.mxu0 %v640_v17 }
  0xff   : > { %560 = vmatpush3.msra.mxu0 %v344_v24 }
 0x100   : > { %561 = vmatprep.subr.mxu0 %v640_v17 }
 0x101   : > { %562 = vmatpush3.msra.mxu0 %v343_v25 }
 0x102   : > { %563 = vmatprep.subr.mxu0 %v640_v17 }
 0x103   : > { %564 = vmatpush3.msra.mxu0 %v342_v26 }
 0x104   : > { %565 = vmatprep.subr.mxu0 %v640_v17 }
 0x105   : > { %566 = vmatpush3.msra.mxu0 %v341_v27 }
 0x106   : > { %567 = vmatprep.subr.mxu0 %v640_v17 }
 0x107   : > { %568 = vmatpush3.msra.mxu0 %v340_v28 }
 0x108   : > { %569 = vmatprep.subr.mxu0 %v640_v17 }
 0x109   : > { %570 = vmatpush3.msra.mxu0 %v339_v29 }
 0x10a   : > { %571 = vmatprep.subr.mxu0 %v640_v17 }
 0x10b   : > { %572 = vmatpush3.msra.mxu0 %v338_v30 }
 0x10c   : > { %573 = vmatprep.subr.mxu0 %v640_v17 }
 0x10d   : > { %574 = vmatpush3.msra.mxu0 %v337_v32 }
 0x10e   : > { %575 = vmatprep.subr.mxu0 %v640_v17 }
 0x10f   : > { %576 = vmatpush3.msra.mxu0 %v336_v33 }
 0x110   : > { %578 = vmatmul.mubr.f32.vlgmr.msra.gmra.mxu0 %v335_v34 }
 0x1d0   : > { %v425_v36 = vpop.f32.mrf.mxu0 }
 0x1d1   : > { %v426_v37 = vadd.f32 %v512_v35, %v425_v36 }
 0x1d2   : > { %v579_v38 = vpop.f32.mrf.mxu0 }
 0x1d3   : > { %v513_v39 = vmul.f32 -1.442695, %v426_v37 }
 0x1d5   : > { %610 = vpow2.f32 %v513_v39 }
 0x1e2   : > { %v611_v40 = vpop.eup %610 }
 0x1e3   : > { %v432_v41 = vadd.f32 1.0, %v611_v40 }
 0x1e5   : > { %612 = vrcp.f32 %v432_v41 }
 0x1f2   : > { %v613_v43 = vpop.eup %612 }
 0x1f3   : > { %v436_v44 = vmul.f32 %v613_v43, %v435_v42 }
 0x1f5   : > { %437 = vst.msk [vmem:[%s781_s5] sm:$0xff] %vm269_vm1, %v436_v44 }
 0x1f6 PF: > { %s15_s20 = sadd.s32 1, %s636_s20   ;;  %s782_s18 = smov %s632_s19 }
 0x1f7   : > { %p12_p8 = scmp.ge.s32.totalorder %s15_s20, 10   ;;  %s783_s19 = smov %s785_s21 }
 0x1f9   :  { %14 = sbr.rel (!%p12_p8) target bundleno = 2 (0x2), region = 82 }

// kernel: _box_offset_intersection_impl.1
= control target key start
LH: loop header
LB: loop body
LE: loop exit
PB: predicated region body
PF: predicated region fallthrough
CT: control target
= control target key end

     0   :  { %s672_s18 = smov 0   ;;  %s674_s19 = smov 0   ;;  %s776_s0 = inlined_call_operand.vmem [shape: f32[8,8,32], index: 0, kind: input, shape index: {}]   ;;  %s777_s1 = inlined_call_operand.vmem [shape: bf16[32,128], index: 1, kind: input, shape index: {}]   ;;  %s778_s2 = inlined_call_operand.vmem [shape: f32[1,128], index: 2, kind: input, shape index: {}]   ;;  %s779_s3 = inlined_call_operand.vmem [shape: f32[128,32], index: 3, kind: input, shape index: {}]   ;;  %s780_s4 = inlined_call_operand.vmem [shape: f32[1,32], index: 4, kind: input, shape index: {}]   ;;  %s781_s5 = inlined_call_operand.vmem [shape: f32[8,32], index: 5, kind: output, shape index: {}]  }
   0x1   :  { %s676_s20 = smov 0  }
   0x2 LB: > { %s24_s21 = sadd.s32 1, %s632_s19  ;;  %p503_p0 = scmp.ge.s32.totalorder %s636_s20, 1  ;;  %s636_s20 = sphi %s676_s20, %s15_s20   ;;  %s632_s19 = sphi %s674_s19, %s783_s19   ;;  %s628_s18 = sphi %s672_s18, %s782_s18  }
   0x3   : > { %p25_p1 = scmp.ge.s32.totalorder %s24_s21, 8  ;;  %p203_p2 = scmp.lt.s32.totalorder %s636_s20, 9 }
   0x5   : > { %s785_s21 = smov (%p25_p1, %s24_s21), 0  ;;  %p204_p3 = pnand %p503_p0, %p203_p2 }
   0x6   : > { %p232_p4 = scmp.lt.s32.totalorder (!%p204_p3), %s628_s18, 7  ;;  %p509_p5 = scmp.ne.s32.totalorder (!%p204_p3), %s628_s18, 0 }
   0x7   : > { %207 = sbr.rel (%p204_p3) target bundleno = 502 (0x1f6), region = 40 }
   0xc   : > { %v608_v0 = vld [vmem:[%s777_s1 + $0x8] sm:$0xff]   ;;  %v638_v1 = vmov 0.0   ;;  %v609_v2 = vld [vmem:[%s777_s1] sm:$0xff]   ;;  %vm639_vm0 = vmmov 0   ;;  %s233_s26 = scalar_select %p232_p4, %s628_s18, 7  ;;  %vm269_vm1 = vcmask 261120  }
   0xd   : > { %537 = vmatprep.subr.bf16.mxu0 %v638_v1  ;;  %541 = vmatprep.mubr.msk.bf16.mxu0 %vm639_vm0, %v638_v1  ;;  %v505_v5 = vld [vmem:[%s778_s2] ss:$0 sm:$0xff] }
   0xe   : > { %538 = vmatpush3.bf16.msra.mxu0 %v608_v0  ;;  %s504_s27 = sshll.u32 %s233_s26, 3 }
   0xf   : > { %539 = vmatprep.subr.bf16.mxu0 %v638_v1  ;;  %s238_s30 = scalar_lea.vmem %s776_s0, %s504_s27 }
  0x10   : > { %v244_v3 = vld [vmem:[%s238_s30] sm:$0xff] }
  0x11   : > { %v245_v4 = vpack.c.bf16 %v244_v3, %v244_v3 }
  0x12   : > { %540 = vmatpush3.bf16.msra.mxu0 %v609_v2 }
  0x15   : > { %542 = vmatmul.mubr.msk.bf16.vlgmr.msra.gmra.mxu0 %vm269_vm1, %v245_v4 }
  0xd5   : > { %v307_v6 = vpop.f32.mrf.mxu0 }
  0xd6   : > { %v308_v7 = vadd.f32 %v505_v5, %v307_v6 }
  0xd7   : > { %v543_v8 = vpop.f32.mrf.mxu0  ;;  %317 = sbr.rel (%p509_p5) target bundleno = 221 (0xdd), region = 44 }
  0xd8   : > { %v313_v9 = vmax.f32 %v308_v7, 0.0 }
  0xd9   : > { %v310_v10 = vpop.f32.mrf.mxu0 }
  0xdb   : > { %v544_v11 = vpop.f32.mrf.mxu0 }
  0xdc   : > { %318 = vst [vmem:[#allocation2] sm:$0xff] %v313_v9  ;;  %319 = vst.msk [vmem:[#allocation3] sm:$0xff] %vm269_vm1, %v244_v3 }
  0xdd PF: > { %p510_p6 = scmp.le.s32.totalorder %s628_s18, 0 }
  0xdf   : > { %323 = sbr.rel (%p510_p6) target bundleno = 232 (0xe8), region = 48 }
  0xe4   : > { %v324_v12 = vld [vmem:[#allocation2] sm:$0xff]  ;;  %v327_v13 = vld [vmem:[#allocation3] sm:$0xff] }
  0xe5   : > { %v325_v14 = vadd.f32 %v324_v12, %v313_v9  ;;  %v328_v15 = vmin.f32 %v327_v13, %v244_v3 }
  0xe7   : > { %326 = vst [vmem:[#allocation2] sm:$0xff] %v325_v14  ;;  %329 = vst.msk [vmem:[#allocation3] sm:$0xff] %vm269_vm1, %v328_v15 }
  0xe8 PF: > { %p511_p7 = scmp.ne.s32.totalorder %s628_s18, 7 }
  0xea   : > { %333 = sbr.rel (%p511_p7) target bundleno = 502 (0x1f6), region = 52 }
  0xef   : > { %v351_v16 = vld [vmem:[%s779_s3 + $0x78] sm:$0xff]  ;;  %v640_v17 = vmov 0.0   ;;  %v350_v18 = vld [vmem:[%s779_s3 + $0x70] sm:$0xff]  ;;  %vm641_vm2 = vmmov 0   ;;  %v349_v19 = vld [vmem:[%s779_s3 + $0x68] sm:$0xff] }
  0xf0   : > { %545 = vmatprep.subr.mxu0 %v640_v17  ;;  %577 = vmatprep.mubr.msk.f32.mxu0 %vm641_vm2, %v640_v17  ;;  %v348_v20 = vld [vmem:[%s779_s3 + $0x60] sm:$0xff]  ;;  %v347_v21 = vld [vmem:[%s779_s3 + $0x58] sm:$0xff]  ;;  %v346_v22 = vld [vmem:[%s779_s3 + $0x50] sm:$0xff] }
  0xf1   : > { %546 = vmatpush3.msra.mxu0 %v351_v16  ;;  %v345_v23 = vld [vmem:[%s779_s3 + $0x48] sm:$0xff]  ;;  %v344_v24 = vld [vmem:[%s779_s3 + $0x40] sm:$0xff]  ;;  %v343_v25 = vld [vmem:[%s779_s3 + $0x38] sm:$0xff] }
  0xf2   : > { %547 = vmatprep.subr.mxu0 %v640_v17  ;;  %v342_v26 = vld [vmem:[%s779_s3 + $0x30] sm:$0xff]  ;;  %v341_v27 = vld [vmem:[%s779_s3 + $0x28] sm:$0xff]  ;;  %v340_v28 = vld [vmem:[%s779_s3 + $0x20] sm:$0xff] }
  0xf3   : > { %548 = vmatpush3.msra.mxu0 %v350_v18  ;;  %v339_v29 = vld [vmem:[%s779_s3 + $0x18] sm:$0xff]  ;;  %v338_v30 = vld [vmem:[%s779_s3 + $0x10] sm:$0xff]  ;;  %v334_v31 = vld [vmem:[#allocation2] sm:$0xff] }
  0xf4   : > { %549 = vmatprep.subr.mxu0 %v640_v17  ;;  %v337_v32 = vld [vmem:[%s779_s3 + $0x8] sm:$0xff]  ;;  %v336_v33 = vld [vmem:[%s779_s3] sm:$0xff]  ;;  %v335_v34 = vmul.f32 0.125, %v334_v31 }
  0xf5   : > { %550 = vmatpush3.msra.mxu0 %v349_v19  ;;  %v512_v35 = vld [vmem:[%s780_s4] ss:$0 sm:$0xff]  ;;  %v435_v42 = vld [vmem:[#allocation3] sm:$0xff] }
  0xf6   : > { %551 = vmatprep.subr.mxu0 %v640_v17 }
  0xf7   : > { %552 = vmatpush3.msra.mxu0 %v348_v20 }
  0xf8   : > { %553 = vmatprep.subr.mxu0 %v640_v17 }
  0xf9   : > { %554 = vmatpush3.msra.mxu0 %v347_v21 }
  0xfa   : > { %555 = vmatprep.subr.mxu0 %v640_v17 }
  0xfb   : > { %556 = vmatpush3.msra.mxu0 %v346_v22 }
  0xfc   : > { %557 = vmatprep.subr.mxu0 %v640_v17 }
  0xfd   : > { %558 = vmatpush3.msra.mxu0 %v345_v23 }
  0xfe   : > { %559 = vmatprep.subr.mxu0 %v640_v17 }
  0xff   : > { %560 = vmatpush3.msra.mxu0 %v344_v24 }
 0x100   : > { %561 = vmatprep.subr.mxu0 %v640_v17 }
 0x101   : > { %562 = vmatpush3.msra.mxu0 %v343_v25 }
 0x102   : > { %563 = vmatprep.subr.mxu0 %v640_v17 }
 0x103   : > { %564 = vmatpush3.msra.mxu0 %v342_v26 }
 0x104   : > { %565 = vmatprep.subr.mxu0 %v640_v17 }
 0x105   : > { %566 = vmatpush3.msra.mxu0 %v341_v27 }
 0x106   : > { %567 = vmatprep.subr.mxu0 %v640_v17 }
 0x107   : > { %568 = vmatpush3.msra.mxu0 %v340_v28 }
 0x108   : > { %569 = vmatprep.subr.mxu0 %v640_v17 }
 0x109   : > { %570 = vmatpush3.msra.mxu0 %v339_v29 }
 0x10a   : > { %571 = vmatprep.subr.mxu0 %v640_v17 }
 0x10b   : > { %572 = vmatpush3.msra.mxu0 %v338_v30 }
 0x10c   : > { %573 = vmatprep.subr.mxu0 %v640_v17 }
 0x10d   : > { %574 = vmatpush3.msra.mxu0 %v337_v32 }
 0x10e   : > { %575 = vmatprep.subr.mxu0 %v640_v17 }
 0x10f   : > { %576 = vmatpush3.msra.mxu0 %v336_v33 }
 0x110   : > { %578 = vmatmul.mubr.f32.vlgmr.msra.gmra.mxu0 %v335_v34 }
 0x1d0   : > { %v425_v36 = vpop.f32.mrf.mxu0 }
 0x1d1   : > { %v426_v37 = vadd.f32 %v512_v35, %v425_v36 }
 0x1d2   : > { %v579_v38 = vpop.f32.mrf.mxu0 }
 0x1d3   : > { %v513_v39 = vmul.f32 -1.442695, %v426_v37 }
 0x1d5   : > { %610 = vpow2.f32 %v513_v39 }
 0x1e2   : > { %v611_v40 = vpop.eup %610 }
 0x1e3   : > { %v432_v41 = vadd.f32 1.0, %v611_v40 }
 0x1e5   : > { %612 = vrcp.f32 %v432_v41 }
 0x1f2   : > { %v613_v43 = vpop.eup %612 }
 0x1f3   : > { %v436_v44 = vmul.f32 %v613_v43, %v435_v42 }
 0x1f5   : > { %437 = vst.msk [vmem:[%s781_s5] sm:$0xff] %vm269_vm1, %v436_v44 }
 0x1f6 PF: > { %s15_s20 = sadd.s32 1, %s636_s20   ;;  %s782_s18 = smov %s632_s19 }
 0x1f7   : > { %p12_p8 = scmp.ge.s32.totalorder %s15_s20, 10   ;;  %s783_s19 = smov %s785_s21 }
 0x1f9   :  { %14 = sbr.rel (!%p12_p8) target bundleno = 2 (0x2), region = 82 }

</bundles_post_ra>
